<compile_context>
chip_gen: v5e
topology: v5e:2x2
jax: 0.10.0
libtpu: 0.0.40
codegen_flags: <defaults>
</compile_context>

<pallas_src>
import math

import jax
import jax.numpy as jnp
import numpy as np
from jax import lax
from jax.experimental import pallas as pl
from jax.experimental.pallas import tpu as pltpu


# Large finite negative instead of -inf: exp(mask - m) underflows to exactly 0,
# matching -inf softmax semantics without risking inf/NaN arithmetic.
MASK_VALUE = -0.7 * float(np.finfo(np.float32).max)


def _pick_tile(total, candidates):
    for c in candidates:
        if c <= total and total % c == 0:
            return c
    return total


# --------------------------------------------------------------------------
# Stage 1: fused QKV projection
# --------------------------------------------------------------------------
def _qkv_proj_kernel(x_ref, w_ref, o_ref):
    # x_ref: (1, tm, D) in native dtype; w_ref: (3D, D) stacked [Wq; Wk; Wv]
    # in PyTorch (out, in) layout.  y = x @ W^T via contraction of the last
    # dims of both operands (no materialized transpose), f32 accumulation.
    x = x_ref[0]
    w = w_ref[...]
    y = lax.dot_general(x, w, (((1,), (1,)), ((), ())),
                        preferred_element_type=jnp.float32)
    o_ref[0] = y.astype(o_ref.dtype)


# --------------------------------------------------------------------------
# Stage 2: flash attention (online softmax) + output projection epilogue
# --------------------------------------------------------------------------
def _make_flash_kernel(tq, tkv, scale):
    def kernel(q_ref, k_ref, v_ref, wo_ref, o_ref, m_sc, l_sc, acc_sc):
        qi = pl.program_id(1)
        ki = pl.program_id(2)
        nk = pl.num_programs(2)

        @pl.when(ki == 0)
        def _init():
            m_sc[...] = jnp.full(m_sc.shape, MASK_VALUE, m_sc.dtype)
            l_sc[...] = jnp.zeros(l_sc.shape, l_sc.dtype)
            acc_sc[...] = jnp.zeros(acc_sc.shape, acc_sc.dtype)

        # Causal block skip: this KV block contributes only if its first key
        # column is <= the last query row of this Q block.
        @pl.when(ki * tkv < (qi + 1) * tq)
        def _compute():
            q = q_ref[0]            # (H, tq, hd), native dtype
            k = k_ref[0]            # (H, tkv, hd)
            v = v_ref[0]            # (H, tkv, hd)

            # Heads batched in a single MXU schedule; contraction on last dims
            # of both operands (no k transpose), f32 accumulation.
            s = jnp.einsum("hqd,hkd->hqk", q, k,
                           preferred_element_type=jnp.float32) * scale

            # Block-local causal mask from iota (no resident (S, S) mask).
            row = qi * tq + lax.broadcasted_iota(jnp.int32, (tq, tkv), 0)
            col = ki * tkv + lax.broadcasted_iota(jnp.int32, (tq, tkv), 1)
            s = jnp.where((col > row)[None, :, :], MASK_VALUE, s)

            # Online softmax (f32 statistics only).
            m_prev = m_sc[...]
            m_new = jnp.maximum(m_prev, jnp.max(s, axis=-1, keepdims=True))
            alpha = jnp.exp(m_prev - m_new)
            p = jnp.exp(s - m_new)

            l_sc[...] = alpha * l_sc[...] + jnp.sum(p, axis=-1, keepdims=True)
            # Cast probabilities back to the value dtype (matches the module's
            # .to(input_dtype) before attn @ V); accumulate in f32.
            acc_sc[...] = alpha * acc_sc[...] + jnp.einsum(
                "hqk,hkd->hqd", p.astype(v.dtype), v,
                preferred_element_type=jnp.float32)
            m_sc[...] = m_new

        @pl.when(ki == nk - 1)
        def _finalize():
            wo = wo_ref[...]                                   # (H, hd, D)
            inv_l = pl.reciprocal(l_sc[...], approx=True)      # EUP, ~free
            attn = (acc_sc[...] * inv_l).astype(wo.dtype)      # (H, tq, hd)
            # Output projection folded into the epilogue:
            #   out[s, e] = sum_{h, d} attn[h, s, d] * wo_r[h, d, e]
            partial = lax.dot_general(attn, wo,
                                      (((2,), (1,)), ((0,), (0,))),
                                      preferred_element_type=jnp.float32)
            o_ref[0] = jnp.sum(partial, axis=0).astype(o_ref.dtype)

    return kernel


# --------------------------------------------------------------------------
# Wrapper
# --------------------------------------------------------------------------
def qkv_attention(x, wq, wk, wv, wo, num_heads,
                  *, block_q=None, block_kv=None, block_m=None):
    """x: (B, S, D); w*: (D, D) PyTorch-style (out, in). Causal self-attention."""
    B, S, D = x.shape
    assert D % num_heads == 0
    hd = D // num_heads
    scale = 1.0 / math.sqrt(hd)

    tm = block_m or _pick_tile(S, (256, 128))
    tq = block_q or _pick_tile(S, (256, 128))
    tkv = block_kv or _pick_tile(S, (512, 256, 128))

    # ---- Stage 1: fused QKV projection (one MXU pass, N = 3D) ----
    w_qkv = jnp.concatenate([wq, wk, wv], axis=0)              # (3D, D)

    qkv = pl.pallas_call(
        _qkv_proj_kernel,
        out_shape=jax.ShapeDtypeStruct((B, S, 3 * D), x.dtype),
        grid_spec=pltpu.PrefetchScalarGridSpec(
            num_scalar_prefetch=0,
            grid=(B, S // tm),
            in_specs=[
                pl.BlockSpec((1, tm, D), lambda b, i: (b, i, 0)),
                # Grid-invariant weight (constant block index -> fetched once).
                pl.BlockSpec((3 * D, D), lambda b, i: (0, 0)),
            ],
            out_specs=pl.BlockSpec((1, tm, 3 * D), lambda b, i: (b, i, 0)),
        ),
        compiler_params=pltpu.CompilerParams(
            dimension_semantics=("parallel", "parallel"),
            vmem_limit_bytes=64 * 1024 * 1024,
        ),
    )(x, w_qkv)

    # ---- Wrapper-side layout plumbing (outside the kernels, one XLA pass) ----
    # Head-major q/k/v: (B, H, S, hd) so the attention kernel batches heads in
    # the einsum with no in-kernel lane slicing / concatenation.
    qkv_hm = qkv.reshape(B, S, 3, num_heads, hd).transpose(2, 0, 3, 1, 4)
    q_hm, k_hm, v_hm = qkv_hm[0], qkv_hm[1], qkv_hm[2]
    # Wo reshaped so the epilogue projection contracts per-head slices without
    # re-concatenating heads: wo_r[h, d, e] = wo[e, h*hd + d].
    wo_r = wo.reshape(D, num_heads, hd).transpose(1, 2, 0)     # (H, hd, D)

    # ---- Stage 2: flash attention + output projection ----
    kernel = _make_flash_kernel(tq, tkv, scale)

    out = pl.pallas_call(
        kernel,
        out_shape=jax.ShapeDtypeStruct((B, S, D), x.dtype),
        grid_spec=pltpu.PrefetchScalarGridSpec(
            num_scalar_prefetch=0,
            grid=(B, S // tq, S // tkv),
            in_specs=[
                pl.BlockSpec((1, num_heads, tq, hd),
                             lambda b, qi, ki: (b, 0, qi, 0)),
                pl.BlockSpec((1, num_heads, tkv, hd),
                             lambda b, qi, ki: (b, 0, ki, 0)),
                pl.BlockSpec((1, num_heads, tkv, hd),
                             lambda b, qi, ki: (b, 0, ki, 0)),
                pl.BlockSpec((num_heads, hd, D),
                             lambda b, qi, ki: (0, 0, 0)),
            ],
            out_specs=pl.BlockSpec((1, tq, D), lambda b, qi, ki: (b, qi, 0)),
            scratch_shapes=[
                pltpu.VMEM((num_heads, tq, 1), jnp.float32),    # running max
                pltpu.VMEM((num_heads, tq, 1), jnp.float32),    # running sum
                pltpu.VMEM((num_heads, tq, hd), jnp.float32),   # output accum
            ],
        ),
        compiler_params=pltpu.CompilerParams(
            dimension_semantics=("parallel", "parallel", "arbitrary"),
            vmem_limit_bytes=64 * 1024 * 1024,
        ),
    )(q_hm, k_hm, v_hm, wo_r)

    return out


# --------------------------------------------------------------------------
# Pure-JAX reference mirroring the PyTorch forward
# --------------------------------------------------------------------------
def reference(x, wq, wk, wv, wo, num_heads):
    B, S, D = x.shape
    hd = D // num_heads
    q = x @ wq.T
    k = x @ wk.T
    v = x @ wv.T
    q = q.reshape(B, S, num_heads, hd).transpose(0, 2, 1, 3)
    k = k.reshape(B, S, num_heads, hd).transpose(0, 2, 1, 3)
    v = v.reshape(B, S, num_heads, hd).transpose(0, 2, 1, 3)
    s = jnp.einsum("bhqd,bhkd->bhqk", q, k) / math.sqrt(hd)
    mask = jnp.triu(jnp.ones((S, S)), k=1) == 1
    s = jnp.where(mask, -jnp.inf, s)
    p = jax.nn.softmax(s.astype(jnp.float32), axis=-1).astype(x.dtype)
    o = jnp.einsum("bhqk,bhkd->bhqd", p, v)
    o = o.transpose(0, 2, 1, 3).reshape(B, S, D)
    return o @ wo.T


if __name__ == "__main__":
    B, S, d_model, num_heads = 2, 8, 32, 4

    key = jax.random.PRNGKey(0)
    kx, kq, kk, kv, ko = jax.random.split(key, 5)

    bound = 1.0 / math.sqrt(d_model)
    x = jax.random.normal(kx, (B, S, d_model), dtype=jnp.float32)
    wq = jax.random.uniform(kq, (d_model, d_model), jnp.float32, -bound, bound)
    wk = jax.random.uniform(kk, (d_model, d_model), jnp.float32, -bound, bound)
    wv = jax.random.uniform(kv, (d_model, d_model), jnp.float32, -bound, bound)
    wo = jax.random.uniform(ko, (d_model, d_model), jnp.float32, -bound, bound)

    out = qkv_attention(x, wq, wk, wv, wo, num_heads)
    out = jax.block_until_ready(out)

    ref = reference(x, wq, wk, wv, wo, num_heads)
    assert out.shape == (B, S, d_model)
    max_err = float(jnp.max(jnp.abs(out - ref)))
    # Slightly loose tolerance: epilogue uses the approximate EUP reciprocal.
    assert jnp.allclose(out, ref, atol=2e-3, rtol=2e-3), (
        f"mismatch vs reference (max abs err {max_err})")

    print("KERNEL_OK")
</pallas_src>

<mosaic_0001>
module attributes {stable_mosaic.version = 11 : i64} {
  func.func @_qkv_proj_kernel(%arg0: i32, %arg1: i32, %arg2: memref<1x8x32xf32, #tpu.memory_space<vmem>>, %arg3: memref<96x32xf32, #tpu.memory_space<vmem>>, %arg4: memref<1x8x96xf32, #tpu.memory_space<vmem>>) attributes {dimension_semantics = [#tpu.dimension_semantics<parallel>, #tpu.dimension_semantics<parallel>], iteration_bounds = array<i64: 2, 1>, scalar_prefetch = 0 : i64, scratch_operands = 0 : i64, tpu.core_type = #tpu.core_type<tc>, window_params = [{transform_indices = @transform_0, window_bounds = array<i64: 1, 8, 32>}, {pipeline_mode = #tpu.pipeline_mode<synchronous>, transform_indices = @transform_1, window_bounds = array<i64: 96, 32>}, {transform_indices = @transform_2, window_bounds = array<i64: 1, 8, 96>}]} {
    %c0 = arith.constant 0 : index
    %c0_0 = arith.constant 0 : index
    %c0_1 = arith.constant 0 : index
    %0 = vector.load %arg2[%c0, %c0_0, %c0_1] : memref<1x8x32xf32, #tpu.memory_space<vmem>>, vector<1x8x32xf32>
    %1 = vector.shape_cast %0 : vector<1x8x32xf32> to vector<8x32xf32>
    %c0_2 = arith.constant 0 : index
    %c0_3 = arith.constant 0 : index
    %2 = vector.load %arg3[%c0_2, %c0_3] : memref<96x32xf32, #tpu.memory_space<vmem>>, vector<96x32xf32>
    %cst = arith.constant dense<0.000000e+00> : vector<8x96xf32>
    %3 = tpu.matmul %1, %2, %cst {dimension_numbers = #tpu.dot_dimension_numbers<[1], [1], [0], [0], [0, 0, 1, 0], [], []>} : vector<8x32xf32>, vector<96x32xf32>, vector<8x96xf32> -> vector<8x96xf32>
    %c0_4 = arith.constant 0 : index
    %c0_5 = arith.constant 0 : index
    %c0_6 = arith.constant 0 : index
    %4 = vector.load %arg4[%c0_4, %c0_5, %c0_6] : memref<1x8x96xf32, #tpu.memory_space<vmem>>, vector<1x8x96xf32>
    %5 = vector.shape_cast %4 : vector<1x8x96xf32> to vector<8x96xf32>
    %6 = vector.shape_cast %3 : vector<8x96xf32> to vector<1x8x96xf32>
    tpu.vector_store %arg4[%c0_4, %c0_5, %c0_6], %6 {strides = array<i32>} : memref<1x8x96xf32, #tpu.memory_space<vmem>>, vector<1x8x96xf32>,
    return
  }
  func.func @transform_0(%arg0: i32, %arg1: i32) -> (i32, i32, i32) {
    %c0_i32 = arith.constant 0 : i32
    %c0_i32_0 = arith.constant 0 : i32
    return %arg0, %arg1, %c0_i32 : i32, i32, i32
  }
  func.func @transform_1(%arg0: i32, %arg1: i32) -> (i32, i32) {
    %c0_i32 = arith.constant 0 : i32
    %c0_i32_0 = arith.constant 0 : i32
    %c0_i32_1 = arith.constant 0 : i32
    return %c0_i32, %c0_i32_0 : i32, i32
  }
  func.func @transform_2(%arg0: i32, %arg1: i32) -> (i32, i32, i32) {
    %c0_i32 = arith.constant 0 : i32
    %c0_i32_0 = arith.constant 0 : i32
    return %arg0, %arg1, %c0_i32 : i32, i32, i32
  }
}

</mosaic_0001>

<bundles_post_ra>
// kernel: tpu_custom_call.1
= control target key start
LH: loop header
LB: loop body
LE: loop exit
PB: predicated region body
PF: predicated region fallthrough
CT: control target
= control target key end

     0   :  { %7 = vsyncpa [#allocation3], 0  ;;  %s647_s0 = inlined_call_operand.vmem [shape: f32[2,8,32], index: 0, kind: input, shape index: {}]   ;;  %s648_s1 = inlined_call_operand.vmem [shape: f32[96,32], index: 1, kind: input, shape index: {}]   ;;  %s649_s2 = inlined_call_operand.hbm [shape: f32[2,8,96], index: 2, kind: output, shape index: {}]  }
   0x1   :  { %9 = vsyncpa [#allocation3 + $0x1], 0  ;;  %s501_s9 = smov 0   ;;  %s503_s10 = smov 0  }
   0x2   :  { %s505_s11 = smov 0   ;;  %s507_s12 = smov 0  }
   0x3   :  { %s509_s13 = smov 0   ;;  %s511_s14 = smov 0  }
   0x4 LB: > { %s327_s15 = sadd.s32 4294967295, %s484_s14   ;;  %s328_s16 = sadd.s32 4294967294, %s484_s14   ;;  %s484_s14 = sphi %s511_s14, %s15_s14   ;;  %s480_s13 = sphi %s509_s13, %s656_s13   ;;  %s476_s12 = sphi %s507_s12, %s655_s12   ;;  %s472_s11 = sphi %s505_s11, %s654_s11   ;;  %s468_s10 = sphi %s503_s10, %s653_s10   ;;  %s464_s9 = sphi %s501_s9, %s652_s9  }
   0x5   : > { %s27_s17 = sadd.s32 1, %s480_s13  ;;  %s85_s18 = sadd.s32 1, %s472_s11 }
   0x6   : > { %p29_p0 = scmp.ge.s32.totalorder %s27_s17, 2  ;;  %p95_p1 = scmp.ne.s32.totalorder %s472_s11, %s468_s10 }
   0x7   : > { %p96_p2 = scmp.eq.s32.totalorder %s327_s15, 1  ;;  %p101_p3 = scmp.ne.s32.totalorder %s468_s10, %s464_s9 }
   0x8   : > { %s658_s17 = smov (%p29_p0, %s27_s17), 0  ;;  %p102_p5 = scmp.eq.s32.totalorder %s328_s16, 1 }
   0x9   : > { %p541_p4 = por %p96_p2, %p95_p1  ;;  %s80_s20 = ssub.s32 %s480_s13, %s658_s17 }
   0xa   : > { %p331_p6 = scmp.ge.s32.totalorder %s484_s14, 1  ;;  %p83_p7 = scmp.eq.s32.totalorder %s80_s20, 0 }
   0xb   : > { %p548_p8 = por %p102_p5, %p101_p3  ;;  %p133_p9 = scmp.lt.s32.totalorder %s484_s14, 3 }
   0xc   : > { %s554_s22 = scalar_select %p83_p7, %s472_s11, %s85_s18  }
   0xd   : > { %p134_p10 = pnand %p331_p6, %p133_p9 }
   0xe   : > { %p157_p11 = scmp.lt.s32.totalorder (!%p134_p10), %s476_s12, 1  ;;  %s154_s6 = sand.u32 (!%p134_p10), 1, %s468_s10  }
   0xf   : > { %137 = sbr.rel (%p134_p10) target bundleno = 197 (0xc5), region = 28  ;;  %s332_s7 = sshll.u32 (!%p134_p10), %s154_s6, 3 }
  0x10   : > { %s348_s8 = sshll.u32 (!%p134_p10), %s476_s12, 3  ;;  %s156_s20 = scalar_lea.vmem (!%p134_p10), [#allocation2], %s332_s7 }
  0x11   : > { %s251_s18 = scalar_lea.hbm (!%p134_p10), %s649_s2, %s348_s8  ;;  %s253_s23 = sshll.u32 (!%p134_p10), %s156_s20, 4  ;;  %s254_s23 = int_to_ptr.vmem [resolvable:$true] %s253_s23 }
  0x12   : > { %s255_s24 = sshll.u32 (!%p134_p10), %s251_s18, 4  ;;  %s426_s29 = scalar_lea.hbm (!%p134_p10), %s649_s2, 16  ;;  %s256_s24 = int_to_ptr.hbm [resolvable:$true] %s255_s24 }
  0x13   : > { %s420_s26 = sshra.s32 (!%p134_p10), %s256_s24, 4  ;;  %s421_s26 = int_to_ptr.hbm [resolvable:$true] %s420_s26 }
  0x14   : > { %v176_v0 = vld [vmem:[%s648_s1 + $0x58] sm:$0xff]  ;;  %vm177_vm0 = vcmask 261120   ;;  %v175_v1 = vld [vmem:[%s648_s1 + $0x50] sm:$0xff]  ;;  %v174_v2 = vld [vmem:[%s648_s1 + $0x48] sm:$0xff]  ;;  %s158_s25 = scalar_select %p157_p11, %s476_s12, 1  ;;  %vm237_vm1 = vcmask 785408  }
  0x15   : > { %334 = vmatpush.xpose.msk.msra.mxu0 %vm177_vm0, %v176_v0  ;;  %v173_v3 = vld [vmem:[%s648_s1 + $0x40] sm:$0xff]  ;;  %v172_v4 = vld [vmem:[%s648_s1 + $0x38] sm:$0xff]  ;;  %v171_v5 = vld [vmem:[%s648_s1 + $0x30] sm:$0xff]  ;;  %s422_s27 = scalar_lea.hbm %s421_s26, 8  ;;  %p427_p1 = scmp.lt.s32.totalorder %s421_s26, %s649_s2 }
  0x16   : > { %v170_v6 = vld [vmem:[%s648_s1 + $0x28] sm:$0xff]  ;;  %v169_v7 = vld [vmem:[%s648_s1 + $0x20] sm:$0xff]  ;;  %v168_v8 = vld [vmem:[%s648_s1 + $0x18] sm:$0xff]  ;;  %s333_s28 = sshll.u32 %s158_s25, 3  ;;  %s240_s25 = scalar_lea.sflag [#allocation3], %s154_s6 }
  0x17   : > { %v167_v9 = vld [vmem:[%s648_s1 + $0x10] sm:$0xff]  ;;  %v166_v10 = vld [vmem:[%s648_s1 + $0x8] sm:$0xff]  ;;  %v165_v11 = vld [vmem:[%s648_s1] sm:$0xff]  ;;  %s163_s5 = scalar_lea.vmem %s647_s0, %s333_s28  ;;  %p423_p12 = scmp.ne.s32.totalorder %s421_s26, %s422_s27 }
  0x18   : > { %v164_v12 = vld [vmem:[%s163_s5] sm:$0xff]  ;;  %p428_p2 = scmp.lt.s32.totalorder %s426_s29, %s422_s27 }
  0x19   : > { %335 = vmatpush.xpose.msk.msra.mxu0 %vm177_vm0, %v175_v1  ;;  %p424_p13 = pnand %p423_p12, %p541_p4 }
  0x1a   : > { %p429_p3 = por %p428_p2, %p427_p1 }
  0x1b   : > { %p425_p0 = pneg %p424_p13 }
  0x1d   : > { %336 = vmatpush.xpose.msk.msra.mxu0 %vm177_vm0, %v174_v2  ;;  %p430_p5 = pnand %p429_p3, %p425_p0 }
  0x21   : > { %337 = vmatpush.xpose.msk.msra.mxu0 %vm177_vm0, %v173_v3 }
  0x25   : > { %338 = vmatpush.xpose.msk.msra.mxu0 %vm177_vm0, %v172_v4 }
  0x29   : > { %339 = vmatpush.xpose.msk.msra.mxu0 %vm177_vm0, %v171_v5 }
  0x2d   : > { %340 = vmatpush.xpose.msk.msra.mxu0 %vm177_vm0, %v170_v6 }
  0x31   : > { %341 = vmatpush.xpose.msk.msra.mxu0 %vm177_vm0, %v169_v7 }
  0x35   : > { %342 = vmatpush.xpose.msk.msra.mxu0 %vm177_vm0, %v168_v8 }
  0x39   : > { %343 = vmatpush.xpose.msk.msra.mxu0 %vm177_vm0, %v167_v9 }
  0x3d   : > { %344 = vmatpush.xpose.msk.msra.mxu0 %vm177_vm0, %v166_v10 }
  0x41   : > { %345 = vmatpush.xpose.msk.msra.mxu0 %vm177_vm0, %v165_v11 }
  0x44   : > { %346 = vmatmul.msk.f32.vlgmr.msra.gmra.mxu0 %vm177_vm0, %v164_v12 }
  0xc1   : > { %v234_v13 = vpop.f32.mrf.mxu0 }
  0xc2   : > { %238 = vst.msk [vmem:[%s156_s20] sm:$0xff] %vm237_vm1, %v234_v13 }
  0xc3   : > { %433 = shalt.err (!%p430_p5)
}
  0xc4   : > { %351 = dma.vmem_to_hbm [thread:$0]  (%p541_p4), %s254_s23, 128, %s256_s24, %s240_s25  }
  0xc5 PF: > { %p357_p6 = scmp.ge.s32.totalorder %s484_s14, 2  ;;  %s267_s4 = sand.u32 1, %s464_s9  }
  0xc6   : > { %s268_s5 = scalar_lea.sflag [#allocation3], %s267_s4 }
  0xc7   : > { %p354_p7 = pnand %p357_p6, %p548_p8 }
  0xc9   : > { %p355_p9 = pneg %p354_p7 }
  0xcb   : > { %459 = dma.done.wait (%p355_p9), %s268_s5, 128  }
  0xcc   : > { %461 = vsyncadd (%p355_p9), %s268_s5, 4294967168  ;;  %s15_s14 = sadd.s32 1, %s484_s14   ;;  %s652_s9 = smov %s468_s10 }
  0xcd   : > { %p12_p10 = scmp.ge.s32.totalorder %s15_s14, 4   ;;  %s653_s10 = smov %s472_s11 }
  0xce   : > { %s654_s11 = smov %s554_s22  ;;  %s655_s12 = smov %s480_s13 }
  0xcf   : > { %s656_s13 = smov %s658_s17  ;;  %14 = sbr.rel (!%p12_p10) target bundleno = 4 (0x4), region = 63 }
  0xd4   :  { %274 = vsyncpa [#allocation3], 1 }
  0xd5   :  { %276 = vsyncpa [#allocation3 + $0x1], 1 }

</bundles_post_ra>
